<compile_context>
chip_gen: v6e
topology: v6e:2x2x1
jax: 0.10.0
libtpu: 0.0.40
codegen_flags: <defaults>
</compile_context>

<pallas_src>
import jax
import jax.numpy as jnp
from jax.experimental import pallas as pl
from jax.experimental.pallas import tpu as pltpu


def segmentation_head(x_nchw, weight_oihw, bias):
    """Conv2d(Cin, Cout, kernel_size=3, stride=1, padding=1) + Identity.

    x_nchw:      (N, Cin, H, W)
    weight_oihw: (Cout, Cin, 3, 3)   (PyTorch layout)
    bias:        (Cout,)
    returns:     (N, Cout, H, W)
    """
    N, Cin, H, W = x_nchw.shape
    Cout = weight_oihw.shape[0]

    # Padded row stride Wp >= W + 2, chosen (when cheap) so Q = H * Wp is a
    # multiple of 128 -> lane-dense, unmasked output stores.
    Wp = W + 2
    for cand in range(W + 2, W + 2 + 129):
        if (H * cand) % 128 == 0:
            Wp = cand
            break
    Q = H * Wp                       # wide output length per image
    Hp = H + 2                       # padded rows (1 top, 1 bottom)
    # Flat padded length: tap (2,2) of the last (junk) wide column reads up to
    # Hp*Wp + 1; round up to a lane multiple for a clean DMA.
    P = -(-(Hp * Wp + 2) // 128) * 128

    # ---- wrapper-side zero padding (hidden under the HBM DMA) -------------
    xp = jnp.pad(x_nchw, ((0, 0), (0, 0), (1, 1), (1, Wp - W - 1)))
    xpf = xp.reshape(N, Cin, Hp * Wp)
    xpf = jnp.pad(xpf, ((0, 0), (0, 0), (0, P - Hp * Wp)))     # (N, Cin, P)

    # 9 per-tap weight matrices, tap-major: w_taps[t] = W[:, :, t//3, t%3].
    w_taps = jnp.transpose(weight_oihw, (2, 3, 0, 1)).reshape(9, Cout, Cin)
    w_taps = w_taps.astype(x_nchw.dtype)       # bf16 path runs MXU in bf16
    b2d = bias.reshape(Cout, 1).astype(jnp.float32)

    def kernel(xp_ref, w_ref, b_ref, o_ref):
        # xp_ref: (Cin, P)  flat zero-padded image (row stride Wp)
        # w_ref:  (9, Cout, Cin)
        # b_ref:  (Cout, 1) f32
        # o_ref:  (Cout, Q) lane-dense wide output
        # Bias folded into the accumulator init (no separate epilogue add).
        acc = jnp.broadcast_to(b_ref[...], (Cout, Q))          # f32
        for t in range(9):
            dy, dx = t // 3, t % 3
            off = dy * Wp + dx
            # Shifted contiguous view of the padded flat row == 3x3 tap.
            tap = xp_ref[:, off:off + Q]                        # (Cin, Q)
            acc = acc + jnp.dot(w_ref[t], tap,
                                preferred_element_type=jnp.float32)
        # nn.Identity() activation -> no-op.
        o_ref[...] = acc.astype(o_ref.dtype)

    out_wide = pl.pallas_call(
        kernel,
        out_shape=jax.ShapeDtypeStruct((N, Cout, Q), x_nchw.dtype),
        grid=(N,),
        in_specs=[
            pl.BlockSpec((None, Cin, P), lambda n: (n, 0, 0)),
            pl.BlockSpec((9, Cout, Cin), lambda n: (0, 0, 0)),
            pl.BlockSpec((Cout, 1), lambda n: (0, 0)),
        ],
        out_specs=pl.BlockSpec((None, Cout, Q), lambda n: (n, 0, 0)),
        compiler_params=pltpu.CompilerParams(
            # Images are independent: shard the batch across TensorCores
            # (2x on v7x, no-op on v5e/v6e) and let Pallas double-buffer.
            dimension_semantics=("parallel",),
            # Tiny blocks here; raise this when adding H row-tiles at
            # production sizes (v7x scoped default is 32 MiB of 64 MiB).
            vmem_limit_bytes=32 * 1024 * 1024,
        ),
    )(xpf, w_taps, b2d)

    # Drop the junk columns per row (Wp - W of them).  At this toy size the
    # slice is negligible; for production sizes with W % 128 == 0 the kernel
    # should store a compact (N, Cout, H*W) output directly instead.
    return out_wide.reshape(N, Cout, H, Wp)[:, :, :, :W]


def _reference_conv(x_nchw, weight_oihw, bias):
    out = jax.lax.conv_general_dilated(
        x_nchw, weight_oihw,
        window_strides=(1, 1),
        padding=((1, 1), (1, 1)),
        dimension_numbers=("NCHW", "OIHW", "NCHW"),
    )
    return out + bias.reshape(1, -1, 1, 1)


if __name__ == "__main__":
    key = jax.random.PRNGKey(0)
    k_x, k_w, k_b = jax.random.split(key, 3)

    N, Cin, H, W = 2, 4, 16, 16
    Cout = 8

    x = jax.random.normal(k_x, (N, Cin, H, W), dtype=jnp.float32)
    weight = jax.random.normal(k_w, (Cout, Cin, 3, 3), dtype=jnp.float32) * 0.1
    bias = jax.random.normal(k_b, (Cout,), dtype=jnp.float32) * 0.1

    seg_head = jax.jit(segmentation_head)
    out = jax.block_until_ready(seg_head(x, weight, bias))

    ref = _reference_conv(x, weight, bias)
    assert out.shape == (N, Cout, H, W)
    assert jnp.allclose(out, ref, atol=1e-4, rtol=1e-4), "mismatch vs reference conv"

    print("KERNEL_OK")
</pallas_src>

<mosaic_0001>
module attributes {stable_mosaic.version = 11 : i64} {
  func.func @kernel(%arg0: i32, %arg1: memref<1x4x512xf32, #tpu.memory_space<vmem>>, %arg2: memref<9x8x4xf32, #tpu.memory_space<vmem>>, %arg3: memref<8x1xf32, #tpu.memory_space<vmem>>, %arg4: memref<1x8x384xf32, #tpu.memory_space<vmem>>) attributes {dimension_semantics = [#tpu.dimension_semantics<parallel>], iteration_bounds = array<i64: 2>, scalar_prefetch = 0 : i64, scratch_operands = 0 : i64, tpu.core_type = #tpu.core_type<tc>, window_params = [{transform_indices = @transform_0, window_bounds = array<i64: 1, 4, 512>}, {pipeline_mode = #tpu.pipeline_mode<synchronous>, transform_indices = @transform_1, window_bounds = array<i64: 9, 8, 4>}, {pipeline_mode = #tpu.pipeline_mode<synchronous>, transform_indices = @transform_2, window_bounds = array<i64: 8, 1>}, {transform_indices = @transform_3, window_bounds = array<i64: 1, 8, 384>}]} {
    %c0 = arith.constant 0 : index
    %c0_0 = arith.constant 0 : index
    %0 = vector.load %arg3[%c0, %c0_0] : memref<8x1xf32, #tpu.memory_space<vmem>>, vector<8x1xf32>
    %1 = vector.shape_cast %0 : vector<8x1xf32> to vector<8x1xf32>
    %2 = vector.broadcast %1 : vector<8x1xf32> to vector<8x384xf32>
    %c0_1 = arith.constant 0 : index
    %c0_2 = arith.constant 0 : index
    %c0_3 = arith.constant 0 : index
    %3 = vector.load %arg1[%c0_1, %c0_2, %c0_3] : memref<1x4x512xf32, #tpu.memory_space<vmem>>, vector<1x4x384xf32>
    %4 = vector.shape_cast %3 : vector<1x4x384xf32> to vector<4x384xf32>
    %c0_4 = arith.constant 0 : index
    %c0_5 = arith.constant 0 : index
    %c0_6 = arith.constant 0 : index
    %5 = vector.load %arg2[%c0_4, %c0_5, %c0_6] : memref<9x8x4xf32, #tpu.memory_space<vmem>>, vector<1x8x4xf32>
    %6 = vector.shape_cast %5 : vector<1x8x4xf32> to vector<8x4xf32>
    %cst = arith.constant dense<0.000000e+00> : vector<8x384xf32>
    %7 = tpu.matmul %6, %4, %cst {dimension_numbers = #tpu.dot_dimension_numbers<[1], [0], [0], [1], [0, 0, 1, 1], [], []>} : vector<8x4xf32>, vector<4x384xf32>, vector<8x384xf32> -> vector<8x384xf32>
    %8 = arith.addf %2, %7 : vector<8x384xf32>
    %c0_7 = arith.constant 0 : index
    %c0_8 = arith.constant 0 : index
    %c1 = arith.constant 1 : index
    %9 = vector.load %arg1[%c0_7, %c0_8, %c1] : memref<1x4x512xf32, #tpu.memory_space<vmem>>, vector<1x4x384xf32>
    %10 = vector.shape_cast %9 : vector<1x4x384xf32> to vector<4x384xf32>
    %c1_9 = arith.constant 1 : index
    %c0_10 = arith.constant 0 : index
    %c0_11 = arith.constant 0 : index
    %11 = vector.load %arg2[%c1_9, %c0_10, %c0_11] : memref<9x8x4xf32, #tpu.memory_space<vmem>>, vector<1x8x4xf32>
    %12 = vector.shape_cast %11 : vector<1x8x4xf32> to vector<8x4xf32>
    %cst_12 = arith.constant dense<0.000000e+00> : vector<8x384xf32>
    %13 = tpu.matmul %12, %10, %cst_12 {dimension_numbers = #tpu.dot_dimension_numbers<[1], [0], [0], [1], [0, 0, 1, 1], [], []>} : vector<8x4xf32>, vector<4x384xf32>, vector<8x384xf32> -> vector<8x384xf32>
    %14 = arith.addf %8, %13 : vector<8x384xf32>
    %c0_13 = arith.constant 0 : index
    %c0_14 = arith.constant 0 : index
    %c2 = arith.constant 2 : index
    %15 = vector.load %arg1[%c0_13, %c0_14, %c2] : memref<1x4x512xf32, #tpu.memory_space<vmem>>, vector<1x4x384xf32>
    %16 = vector.shape_cast %15 : vector<1x4x384xf32> to vector<4x384xf32>
    %c2_15 = arith.constant 2 : index
    %c0_16 = arith.constant 0 : index
    %c0_17 = arith.constant 0 : index
    %17 = vector.load %arg2[%c2_15, %c0_16, %c0_17] : memref<9x8x4xf32, #tpu.memory_space<vmem>>, vector<1x8x4xf32>
    %18 = vector.shape_cast %17 : vector<1x8x4xf32> to vector<8x4xf32>
    %cst_18 = arith.constant dense<0.000000e+00> : vector<8x384xf32>
    %19 = tpu.matmul %18, %16, %cst_18 {dimension_numbers = #tpu.dot_dimension_numbers<[1], [0], [0], [1], [0, 0, 1, 1], [], []>} : vector<8x4xf32>, vector<4x384xf32>, vector<8x384xf32> -> vector<8x384xf32>
    %20 = arith.addf %14, %19 : vector<8x384xf32>
    %c0_19 = arith.constant 0 : index
    %c0_20 = arith.constant 0 : index
    %c24 = arith.constant 24 : index
    %21 = vector.load %arg1[%c0_19, %c0_20, %c24] : memref<1x4x512xf32, #tpu.memory_space<vmem>>, vector<1x4x384xf32>
    %22 = vector.shape_cast %21 : vector<1x4x384xf32> to vector<4x384xf32>
    %c3 = arith.constant 3 : index
    %c0_21 = arith.constant 0 : index
    %c0_22 = arith.constant 0 : index
    %23 = vector.load %arg2[%c3, %c0_21, %c0_22] : memref<9x8x4xf32, #tpu.memory_space<vmem>>, vector<1x8x4xf32>
    %24 = vector.shape_cast %23 : vector<1x8x4xf32> to vector<8x4xf32>
    %cst_23 = arith.constant dense<0.000000e+00> : vector<8x384xf32>
    %25 = tpu.matmul %24, %22, %cst_23 {dimension_numbers = #tpu.dot_dimension_numbers<[1], [0], [0], [1], [0, 0, 1, 1], [], []>} : vector<8x4xf32>, vector<4x384xf32>, vector<8x384xf32> -> vector<8x384xf32>
    %26 = arith.addf %20, %25 : vector<8x384xf32>
    %c0_24 = arith.constant 0 : index
    %c0_25 = arith.constant 0 : index
    %c25 = arith.constant 25 : index
    %27 = vector.load %arg1[%c0_24, %c0_25, %c25] : memref<1x4x512xf32, #tpu.memory_space<vmem>>, vector<1x4x384xf32>
    %28 = vector.shape_cast %27 : vector<1x4x384xf32> to vector<4x384xf32>
    %c4 = arith.constant 4 : index
    %c0_26 = arith.constant 0 : index
    %c0_27 = arith.constant 0 : index
    %29 = vector.load %arg2[%c4, %c0_26, %c0_27] : memref<9x8x4xf32, #tpu.memory_space<vmem>>, vector<1x8x4xf32>
    %30 = vector.shape_cast %29 : vector<1x8x4xf32> to vector<8x4xf32>
    %cst_28 = arith.constant dense<0.000000e+00> : vector<8x384xf32>
    %31 = tpu.matmul %30, %28, %cst_28 {dimension_numbers = #tpu.dot_dimension_numbers<[1], [0], [0], [1], [0, 0, 1, 1], [], []>} : vector<8x4xf32>, vector<4x384xf32>, vector<8x384xf32> -> vector<8x384xf32>
    %32 = arith.addf %26, %31 : vector<8x384xf32>
    %c0_29 = arith.constant 0 : index
    %c0_30 = arith.constant 0 : index
    %c26 = arith.constant 26 : index
    %33 = vector.load %arg1[%c0_29, %c0_30, %c26] : memref<1x4x512xf32, #tpu.memory_space<vmem>>, vector<1x4x384xf32>
    %34 = vector.shape_cast %33 : vector<1x4x384xf32> to vector<4x384xf32>
    %c5 = arith.constant 5 : index
    %c0_31 = arith.constant 0 : index
    %c0_32 = arith.constant 0 : index
    %35 = vector.load %arg2[%c5, %c0_31, %c0_32] : memref<9x8x4xf32, #tpu.memory_space<vmem>>, vector<1x8x4xf32>
    %36 = vector.shape_cast %35 : vector<1x8x4xf32> to vector<8x4xf32>
    %cst_33 = arith.constant dense<0.000000e+00> : vector<8x384xf32>
    %37 = tpu.matmul %36, %34, %cst_33 {dimension_numbers = #tpu.dot_dimension_numbers<[1], [0], [0], [1], [0, 0, 1, 1], [], []>} : vector<8x4xf32>, vector<4x384xf32>, vector<8x384xf32> -> vector<8x384xf32>
    %38 = arith.addf %32, %37 : vector<8x384xf32>
    %c0_34 = arith.constant 0 : index
    %c0_35 = arith.constant 0 : index
    %c48 = arith.constant 48 : index
    %39 = vector.load %arg1[%c0_34, %c0_35, %c48] : memref<1x4x512xf32, #tpu.memory_space<vmem>>, vector<1x4x384xf32>
    %40 = vector.shape_cast %39 : vector<1x4x384xf32> to vector<4x384xf32>
    %c6 = arith.constant 6 : index
    %c0_36 = arith.constant 0 : index
    %c0_37 = arith.constant 0 : index
    %41 = vector.load %arg2[%c6, %c0_36, %c0_37] : memref<9x8x4xf32, #tpu.memory_space<vmem>>, vector<1x8x4xf32>
    %42 = vector.shape_cast %41 : vector<1x8x4xf32> to vector<8x4xf32>
    %cst_38 = arith.constant dense<0.000000e+00> : vector<8x384xf32>
    %43 = tpu.matmul %42, %40, %cst_38 {dimension_numbers = #tpu.dot_dimension_numbers<[1], [0], [0], [1], [0, 0, 1, 1], [], []>} : vector<8x4xf32>, vector<4x384xf32>, vector<8x384xf32> -> vector<8x384xf32>
    %44 = arith.addf %38, %43 : vector<8x384xf32>
    %c0_39 = arith.constant 0 : index
    %c0_40 = arith.constant 0 : index
    %c49 = arith.constant 49 : index
    %45 = vector.load %arg1[%c0_39, %c0_40, %c49] : memref<1x4x512xf32, #tpu.memory_space<vmem>>, vector<1x4x384xf32>
    %46 = vector.shape_cast %45 : vector<1x4x384xf32> to vector<4x384xf32>
    %c7 = arith.constant 7 : index
    %c0_41 = arith.constant 0 : index
    %c0_42 = arith.constant 0 : index
    %47 = vector.load %arg2[%c7, %c0_41, %c0_42] : memref<9x8x4xf32, #tpu.memory_space<vmem>>, vector<1x8x4xf32>
    %48 = vector.shape_cast %47 : vector<1x8x4xf32> to vector<8x4xf32>
    %cst_43 = arith.constant dense<0.000000e+00> : vector<8x384xf32>
    %49 = tpu.matmul %48, %46, %cst_43 {dimension_numbers = #tpu.dot_dimension_numbers<[1], [0], [0], [1], [0, 0, 1, 1], [], []>} : vector<8x4xf32>, vector<4x384xf32>, vector<8x384xf32> -> vector<8x384xf32>
    %50 = arith.addf %44, %49 : vector<8x384xf32>
    %c0_44 = arith.constant 0 : index
    %c0_45 = arith.constant 0 : index
    %c50 = arith.constant 50 : index
    %51 = vector.load %arg1[%c0_44, %c0_45, %c50] : memref<1x4x512xf32, #tpu.memory_space<vmem>>, vector<1x4x384xf32>
    %52 = vector.shape_cast %51 : vector<1x4x384xf32> to vector<4x384xf32>
    %c8 = arith.constant 8 : index
    %c0_46 = arith.constant 0 : index
    %c0_47 = arith.constant 0 : index
    %53 = vector.load %arg2[%c8, %c0_46, %c0_47] : memref<9x8x4xf32, #tpu.memory_space<vmem>>, vector<1x8x4xf32>
    %54 = vector.shape_cast %53 : vector<1x8x4xf32> to vector<8x4xf32>
    %cst_48 = arith.constant dense<0.000000e+00> : vector<8x384xf32>
    %55 = tpu.matmul %54, %52, %cst_48 {dimension_numbers = #tpu.dot_dimension_numbers<[1], [0], [0], [1], [0, 0, 1, 1], [], []>} : vector<8x4xf32>, vector<4x384xf32>, vector<8x384xf32> -> vector<8x384xf32>
    %56 = arith.addf %50, %55 : vector<8x384xf32>
    %c0_49 = arith.constant 0 : index
    %c0_50 = arith.constant 0 : index
    %c0_51 = arith.constant 0 : index
    %57 = vector.load %arg4[%c0_49, %c0_50, %c0_51] : memref<1x8x384xf32, #tpu.memory_space<vmem>>, vector<1x8x384xf32>
    %58 = vector.shape_cast %57 : vector<1x8x384xf32> to vector<8x384xf32>
    %59 = vector.shape_cast %56 : vector<8x384xf32> to vector<1x8x384xf32>
    tpu.vector_store %arg4[%c0_49, %c0_50, %c0_51], %59 {strides = array<i32>} : memref<1x8x384xf32, #tpu.memory_space<vmem>>, vector<1x8x384xf32>,
    return
  }
  func.func @transform_0(%arg0: i32) -> (i32, i32, i32) {
    %c0_i32 = arith.constant 0 : i32
    %c0_i32_0 = arith.constant 0 : i32
    %c0_i32_1 = arith.constant 0 : i32
    return %arg0, %c0_i32, %c0_i32_0 : i32, i32, i32
  }
  func.func @transform_1(%arg0: i32) -> (i32, i32, i32) {
    %c0_i32 = arith.constant 0 : i32
    %c0_i32_0 = arith.constant 0 : i32
    %c0_i32_1 = arith.constant 0 : i32
    %c0_i32_2 = arith.constant 0 : i32
    return %c0_i32, %c0_i32_0, %c0_i32_1 : i32, i32, i32
  }
  func.func @transform_2(%arg0: i32) -> (i32, i32) {
    %c0_i32 = arith.constant 0 : i32
    %c0_i32_0 = arith.constant 0 : i32
    %c0_i32_1 = arith.constant 0 : i32
    return %c0_i32, %c0_i32_0 : i32, i32
  }
  func.func @transform_3(%arg0: i32) -> (i32, i32, i32) {
    %c0_i32 = arith.constant 0 : i32
    %c0_i32_0 = arith.constant 0 : i32
    %c0_i32_1 = arith.constant 0 : i32
    return %arg0, %c0_i32, %c0_i32_0 : i32, i32, i32
  }
}

</mosaic_0001>

<bundles_post_ra>
// kernel: segmentation_head.1
= control target key start
LH: loop header
LB: loop body
LE: loop exit
PB: predicated region body
PF: predicated region fallthrough
CT: control target
= control target key end

     0   :  { %s1969_s12 = smov 0   ;;  %s2104_s0 = inlined_call_operand.vmem [shape: f32[2,4,512], index: 0, kind: input, shape index: {}]   ;;  %s2105_s1 = inlined_call_operand.vmem [shape: f32[9,8,4], index: 1, kind: input, shape index: {}]   ;;  %s2106_s2 = inlined_call_operand.vmem [shape: f32[8,1], index: 2, kind: input, shape index: {}]   ;;  %s2107_s3 = inlined_call_operand.vmem [shape: f32[2,8,384], index: 3, kind: output, shape index: {}]  }
   0x1 LB: > { %s1780_s13 = sadd.s32 4294967295, %s1936_s12   ;;  %p1784_p0 = scmp.ge.s32.totalorder %s1936_s12, 1  ;;  %s1936_s12 = sphi %s1969_s12, %s13_s12  }
   0x2   : > { %p137_p1 = scmp.lt.s32.totalorder %s1936_s12, 3 }
   0x4   : > { %p138_p2 = pnand %p1784_p0, %p137_p1 }
   0x5   : > { %p161_p3 = scmp.lt.s32.totalorder (!%p138_p2), %s1780_s13, 1  ;;  %s1940_s18 = smov (!%p138_p2), 127  }
   0x6   : > { %141 = sbr.rel (%p138_p2) target bundleno = 390 (0x186), region = 32  ;;  %s1941_s21 = smov (!%p138_p2), 126  }
   0x7   : > { %s1942_s22 = smov (!%p138_p2), 104   ;;  %s1943_s23 = smov (!%p138_p2), 103  }
   0x8   : > { %s1944_s24 = smov (!%p138_p2), 102   ;;  %s1945_s25 = smov (!%p138_p2), 80  }
   0x9   : > { %s1946_s26 = smov (!%p138_p2), 79   ;;  %s1948_s27 = smov (!%p138_p2), 78  }
   0xb   : > { %v1938_v0 = vmov 0.0   ;;  %s2109_s13 = smov (!%p161_p3, %s1780_s13), 1  ;;  %vm1939_vm0 = vmmov 0   ;;  %vm187_vm1 = vcmask 1043456   ;;  %v179_v5 = vld [vmem:[%s2105_s1] sm:$0xff]  ;;  %vm183_vm2 = vcmask 31744  }
   0xc   : > { %258 = vmatprep.mubr.f32.mxu0 %v1938_v0  ;;  %1862 = vmatprep.subr.mxu1 %v1938_v0  ;;  %s1843_s14 = sshll.u32 %s2109_s13, 4  ;;  %v1947_v7 = vmov 0   ;;  %v171_v8 = vld [vmem:[%s2106_s2] sm:$0xff]  ;;  %vm354_vm3 = vcmask 1039360   ;;  %v1793_v15 = vld [vmem:[%s2105_s1 + $0x8] sm:$0xff]  ;;  %vm527_vm4 = vcmask 1031168  }
   0xd   : > { %1864 = vmatprep.mubr.msk.f32.mxu1 %vm1939_vm0, %v1938_v0  ;;  %s165_s17 = scalar_lea.vmem %s2104_s0, %s1843_s14  ;;  %1927 = vset.pattern.permute.xlu0 %v1947_v7  ;;  %v1799_v22 = vld [vmem:[%s2105_s1 + $0x10] sm:$0xff]  ;;  %vm700_vm5 = vcmask 850944   ;;  %v1805_v30 = vld [vmem:[%s2105_s1 + $0x18] sm:$0xff]  ;;  %vm873_vm6 = vcmask 842752   ;;  %v1811_v38 = vld [vmem:[%s2105_s1 + $0x20] sm:$0xff]  ;;  %vm1046_vm7 = vcmask 834560  }
   0xe   : > { %v339_v1 = vld [vmem:[%s165_s17 + $0x8] sm:$0xff]  ;;  %v338_v2 = vld [vmem:[%s165_s17] sm:$0xff]  ;;  %vm1219_vm8 = vcmask 654336   ;;  %v1823_v54 = vld [vmem:[%s2105_s1 + $0x30] sm:$0xff]  ;;  %vm1392_vm9 = vcmask 646144   ;;  %vm1565_vm10 = vcmask 637952  }
   0xf   : > { %v178_v3 = vld [vmem:[%s165_s17 + $0x8] sm:$0xf]  ;;  %350 = vrot.lane.b32.xlu0 %v339_v1, %s1940_s18  ;;  %346 = vrot.lane.b32.xlu1 %v338_v2, %s1940_s18  ;;  %v344_v4 = vcombine.high %v338_v2, %v338_v2  ;;  %v345_v6 = vcombine.high %v339_v1, %v339_v1  ;;  %v1829_v62 = vld [vmem:[%s2105_s1 + $0x38] sm:$0xff] }
  0x10   : > { %1863 = vmatpush3.msk.msra.mxu1 %vm187_vm1, %v178_v3  ;;  %v1817_v46 = vld [vmem:[%s2105_s1 + $0x28] sm:$0xff]  ;;  %v1835_v7 = vld [vmem:[%s2105_s1 + $0x40] sm:$0xff] }
  0x11   : > { %1788 = vmatprep.subr.msk.mxu0 %vm187_vm1, %v344_v4  ;;  %1867 = vmatprep.subr.mxu1 %v1938_v0 }
  0x12   : > { %1789 = vmatpush1.msk.msra.mxu0 %vm187_vm1, %v338_v2  ;;  %1865 = vmatmul.mubr.msk.f32.vlgmr.msra.gmra.mxu1 %vm183_vm2, %v179_v5 }
  0x13   : > { %523 = vrot.lane.b32.xlu1 %v339_v1, %s1941_s21  ;;  %348 = vrot.lane.b32.xlu0 %v344_v4, %s1940_s18 }
  0x14   : > { %1790 = vmatmul.mubr.msk.f32.vlgmr.msra.gmra.mxu0 %vm183_vm2, %v179_v5  ;;  %1869 = vmatprep.mubr.msk.f32.mxu1 %vm1939_vm0, %v1938_v0 }
  0x15   : > { %431 = vmatprep.mubr.f32.mxu0 %v1938_v0 }
  0x17   : > { %352 = vrot.lane.b32.xlu1 %v345_v6, %s1940_s18  ;;  %521 = vrot.lane.b32.xlu0 %v344_v4, %s1941_s21 }
  0x1b   : > { %525 = vrot.lane.b32.xlu1 %v345_v6, %s1941_s21  ;;  %519 = vrot.lane.b32.xlu0 %v338_v2, %s1941_s21  ;;  %s1907_s21 = smul.u32 24, %s2109_s13 }
  0x1f   : > { %696 = vrot.lane.b32.xlu1 %v339_v1, %s1942_s22  ;;  %694 = vrot.lane.b32.xlu0 %v344_v4, %s1942_s22 }
  0x23   : > { %698 = vrot.lane.b32.xlu1 %v345_v6, %s1942_s22  ;;  %692 = vrot.lane.b32.xlu0 %v338_v2, %s1942_s22 }
  0x27   : > { %869 = vrot.lane.b32.xlu1 %v339_v1, %s1943_s23  ;;  %867 = vrot.lane.b32.xlu0 %v344_v4, %s1943_s23 }
  0x2b   : > { %871 = vrot.lane.b32.xlu1 %v345_v6, %s1943_s23  ;;  %865 = vrot.lane.b32.xlu0 %v338_v2, %s1943_s23 }
  0x2f   : > { %1042 = vrot.lane.b32.xlu1 %v339_v1, %s1944_s24  ;;  %1040 = vrot.lane.b32.xlu0 %v344_v4, %s1944_s24 }
  0x33   : > { %1044 = vrot.lane.b32.xlu1 %v345_v6, %s1944_s24  ;;  %1038 = vrot.lane.b32.xlu0 %v338_v2, %s1944_s24  ;;  %s170_s24 = scalar_lea.vmem %s2107_s3, %s1907_s21 }
  0x37   : > { %1215 = vrot.lane.b32.xlu1 %v339_v1, %s1945_s25  ;;  %1213 = vrot.lane.b32.xlu0 %v344_v4, %s1945_s25 }
  0x3b   : > { %1217 = vrot.lane.b32.xlu1 %v345_v6, %s1945_s25  ;;  %1211 = vrot.lane.b32.xlu0 %v338_v2, %s1945_s25 }
  0x3f   : > { %1388 = vrot.lane.b32.xlu1 %v339_v1, %s1946_s26  ;;  %1386 = vrot.lane.b32.xlu0 %v344_v4, %s1946_s26 }
  0x43   : > { %1390 = vrot.lane.b32.xlu1 %v345_v6, %s1946_s26  ;;  %1384 = vrot.lane.b32.xlu0 %v338_v2, %s1946_s26 }
  0x47   : > { %1561 = vrot.lane.b32.xlu1 %v339_v1, %s1948_s27  ;;  %1559 = vrot.lane.b32.xlu0 %v344_v4, %s1948_s27 }
  0x4b   : > { %1563 = vrot.lane.b32.xlu1 %v345_v6, %s1948_s27  ;;  %1557 = vrot.lane.b32.xlu0 %v338_v2, %s1948_s27 }
  0x4f   : > { %174 = vperm.xlu0 %1927, %v171_v8  }
  0x81   : > { %v351_v9 = vpop.permute.xlu0 %350  ;;  %v347_v10 = vpop.permute.xlu1 %346 }
  0x85   : > { %v524_v11 = vpop.permute.xlu1 %523  ;;  %v349_v12 = vpop.permute.xlu0 %348 }
  0x86   : > { %v355_v13 = vsel %vm354_vm3, %v347_v10, %v349_v12  ;;  %v356_v14 = vsel %vm354_vm3, %v349_v12, %v351_v9 }
  0x87   : > { %1794 = vmatprep.subr.msk.mxu0 %vm187_vm1, %v356_v14 }
  0x88   : > { %1795 = vmatpush1.msk.msra.mxu0 %vm187_vm1, %v355_v13 }
  0x89   : > { %v353_v16 = vpop.permute.xlu1 %352  ;;  %v522_v17 = vpop.permute.xlu0 %521  ;;  %1796 = vmatmul.mubr.msk.f32.vlgmr.msra.gmra.mxu0 %vm183_vm2, %v1793_v15 }
  0x8a   : > { %v357_v18 = vsel %vm354_vm3, %v351_v9, %v353_v16  ;;  %v529_v19 = vsel %vm527_vm4, %v522_v17, %v524_v11  ;;  %604 = vmatprep.mubr.f32.mxu0 %v1938_v0 }
  0x8b   : > { %1868 = vmatpush3.msk.msra.mxu1 %vm187_vm1, %v357_v18  ;;  %1800 = vmatprep.subr.msk.mxu0 %vm187_vm1, %v529_v19 }
  0x8c   : > { %1872 = vmatprep.subr.mxu1 %v1938_v0  ;;  %1870 = vmatmul.mubr.msk.f32.vlgmr.msra.gmra.mxu1 %vm183_vm2, %v1793_v15 }
  0x8d   : > { %v526_v20 = vpop.permute.xlu1 %525  ;;  %v520_v21 = vpop.permute.xlu0 %519  ;;  %1874 = vmatprep.mubr.msk.f32.mxu1 %vm1939_vm0, %v1938_v0 }
  0x8e   : > { %v530_v23 = vsel %vm527_vm4, %v524_v11, %v526_v20  ;;  %v528_v24 = vsel %vm527_vm4, %v520_v21, %v522_v17 }
  0x8f   : > { %1801 = vmatpush1.msk.msra.mxu0 %vm187_vm1, %v528_v24  ;;  %1873 = vmatpush3.msk.msra.mxu1 %vm187_vm1, %v530_v23 }
  0x90   : > { %1877 = vmatprep.subr.mxu1 %v1938_v0  ;;  %1802 = vmatmul.mubr.msk.f32.vlgmr.msra.gmra.mxu0 %vm183_vm2, %v1799_v22 }
  0x91   : > { %v697_v25 = vpop.permute.xlu1 %696  ;;  %v695_v26 = vpop.permute.xlu0 %694  ;;  %1875 = vmatmul.mubr.msk.f32.vlgmr.msra.gmra.mxu1 %vm183_vm2, %v1799_v22  ;;  %777 = vmatprep.mubr.f32.mxu0 %v1938_v0 }
  0x92   : > { %v702_v27 = vsel %vm700_vm5, %v695_v26, %v697_v25  ;;  %1879 = vmatprep.mubr.msk.f32.mxu1 %vm1939_vm0, %v1938_v0 }
  0x93   : > { %1806 = vmatprep.subr.msk.mxu0 %vm187_vm1, %v702_v27 }
  0x95   : > { %v699_v28 = vpop.permute.xlu1 %698  ;;  %v693_v29 = vpop.permute.xlu0 %692 }
  0x96   : > { %v703_v31 = vsel %vm700_vm5, %v697_v25, %v699_v28  ;;  %v701_v32 = vsel %vm700_vm5, %v693_v29, %v695_v26 }
  0x97   : > { %1807 = vmatpush1.msk.msra.mxu0 %vm187_vm1, %v701_v32  ;;  %1878 = vmatpush3.msk.msra.mxu1 %vm187_vm1, %v703_v31 }
  0x98   : > { %1882 = vmatprep.subr.mxu1 %v1938_v0  ;;  %1808 = vmatmul.mubr.msk.f32.vlgmr.msra.gmra.mxu0 %vm183_vm2, %v1805_v30 }
  0x99   : > { %v870_v33 = vpop.permute.xlu1 %869  ;;  %v868_v34 = vpop.permute.xlu0 %867  ;;  %1880 = vmatmul.mubr.msk.f32.vlgmr.msra.gmra.mxu1 %vm183_vm2, %v1805_v30  ;;  %950 = vmatprep.mubr.f32.mxu0 %v1938_v0 }
  0x9a   : > { %v875_v35 = vsel %vm873_vm6, %v868_v34, %v870_v33  ;;  %1884 = vmatprep.mubr.msk.f32.mxu1 %vm1939_vm0, %v1938_v0 }
  0x9b   : > { %1812 = vmatprep.subr.msk.mxu0 %vm187_vm1, %v875_v35 }
  0x9d   : > { %v872_v36 = vpop.permute.xlu1 %871  ;;  %v866_v37 = vpop.permute.xlu0 %865 }
  0x9e   : > { %v876_v39 = vsel %vm873_vm6, %v870_v33, %v872_v36  ;;  %v874_v40 = vsel %vm873_vm6, %v866_v37, %v868_v34 }
  0x9f   : > { %1813 = vmatpush1.msk.msra.mxu0 %vm187_vm1, %v874_v40  ;;  %1883 = vmatpush3.msk.msra.mxu1 %vm187_vm1, %v876_v39 }
  0xa0   : > { %1887 = vmatprep.subr.mxu1 %v1938_v0  ;;  %1814 = vmatmul.mubr.msk.f32.vlgmr.msra.gmra.mxu0 %vm183_vm2, %v1811_v38 }
  0xa1   : > { %v1043_v41 = vpop.permute.xlu1 %1042  ;;  %v1041_v42 = vpop.permute.xlu0 %1040  ;;  %1885 = vmatmul.mubr.msk.f32.vlgmr.msra.gmra.mxu1 %vm183_vm2, %v1811_v38  ;;  %1123 = vmatprep.mubr.f32.mxu0 %v1938_v0 }
  0xa2   : > { %v1048_v43 = vsel %vm1046_vm7, %v1041_v42, %v1043_v41  ;;  %1889 = vmatprep.mubr.msk.f32.mxu1 %vm1939_vm0, %v1938_v0 }
  0xa3   : > { %1818 = vmatprep.subr.msk.mxu0 %vm187_vm1, %v1048_v43 }
  0xa5   : > { %v1045_v44 = vpop.permute.xlu1 %1044  ;;  %v1039_v45 = vpop.permute.xlu0 %1038 }
  0xa6   : > { %v1049_v47 = vsel %vm1046_vm7, %v1043_v41, %v1045_v44  ;;  %v1047_v48 = vsel %vm1046_vm7, %v1039_v45, %v1041_v42 }
  0xa7   : > { %1819 = vmatpush1.msk.msra.mxu0 %vm187_vm1, %v1047_v48  ;;  %1888 = vmatpush3.msk.msra.mxu1 %vm187_vm1, %v1049_v47 }
  0xa8   : > { %1820 = vmatmul.mubr.msk.f32.vlgmr.msra.gmra.mxu0 %vm183_vm2, %v1817_v46  ;;  %1890 = vmatmul.mubr.msk.f32.vlgmr.msra.gmra.mxu1 %vm183_vm2, %v1817_v46 }
  0xa9   : > { %v1216_v49 = vpop.permute.xlu1 %1215  ;;  %v1214_v50 = vpop.permute.xlu0 %1213  ;;  %1892 = vmatprep.subr.mxu1 %v1938_v0  ;;  %1296 = vmatprep.mubr.f32.mxu0 %v1938_v0 }
  0xaa   : > { %v1221_v51 = vsel %vm1219_vm8, %v1214_v50, %v1216_v49  ;;  %1894 = vmatprep.mubr.msk.f32.mxu1 %vm1939_vm0, %v1938_v0 }
  0xab   : > { %1824 = vmatprep.subr.msk.mxu0 %vm187_vm1, %v1221_v51 }
  0xad   : > { %v1218_v52 = vpop.permute.xlu1 %1217  ;;  %v1212_v53 = vpop.permute.xlu0 %1211 }
  0xae   : > { %v1222_v55 = vsel %vm1219_vm8, %v1216_v49, %v1218_v52  ;;  %v1220_v56 = vsel %vm1219_vm8, %v1212_v53, %v1214_v50 }
  0xaf   : > { %1825 = vmatpush1.msk.msra.mxu0 %vm187_vm1, %v1220_v56  ;;  %1893 = vmatpush3.msk.msra.mxu1 %vm187_vm1, %v1222_v55 }
  0xb0   : > { %1826 = vmatmul.mubr.msk.f32.vlgmr.msra.gmra.mxu0 %vm183_vm2, %v1823_v54  ;;  %1895 = vmatmul.mubr.msk.f32.vlgmr.msra.gmra.mxu1 %vm183_vm2, %v1823_v54 }
  0xb1   : > { %v1389_v57 = vpop.permute.xlu1 %1388  ;;  %v1387_v58 = vpop.permute.xlu0 %1386  ;;  %1897 = vmatprep.subr.mxu1 %v1938_v0  ;;  %1469 = vmatprep.mubr.f32.mxu0 %v1938_v0 }
  0xb2   : > { %v1394_v59 = vsel %vm1392_vm9, %v1387_v58, %v1389_v57  ;;  %1899 = vmatprep.mubr.msk.f32.mxu1 %vm1939_vm0, %v1938_v0 }
  0xb3   : > { %1830 = vmatprep.subr.msk.mxu0 %vm187_vm1, %v1394_v59 }
  0xb5   : > { %v1391_v60 = vpop.permute.xlu1 %1390  ;;  %v1385_v61 = vpop.permute.xlu0 %1384 }
  0xb6   : > { %v1395_v63 = vsel %vm1392_vm9, %v1389_v57, %v1391_v60  ;;  %v1393_v1 = vsel %vm1392_vm9, %v1385_v61, %v1387_v58 }
  0xb7   : > { %1831 = vmatpush1.msk.msra.mxu0 %vm187_vm1, %v1393_v1  ;;  %1898 = vmatpush3.msk.msra.mxu1 %vm187_vm1, %v1395_v63 }
  0xb8   : > { %1832 = vmatmul.mubr.msk.f32.vlgmr.msra.gmra.mxu0 %vm183_vm2, %v1829_v62  ;;  %1900 = vmatmul.mubr.msk.f32.vlgmr.msra.gmra.mxu1 %vm183_vm2, %v1829_v62 }
  0xb9   : > { %v1562_v2 = vpop.permute.xlu1 %1561  ;;  %v1560_v3 = vpop.permute.xlu0 %1559  ;;  %1902 = vmatprep.subr.mxu1 %v1938_v0  ;;  %1642 = vmatprep.mubr.f32.mxu0 %v1938_v0 }
  0xba   : > { %v1567_v4 = vsel %vm1565_vm10, %v1560_v3, %v1562_v2  ;;  %1904 = vmatprep.mubr.msk.f32.mxu1 %vm1939_vm0, %v1938_v0 }
  0xbb   : > { %1836 = vmatprep.subr.msk.mxu0 %vm187_vm1, %v1567_v4 }
  0xbd   : > { %v1564_v5 = vpop.permute.xlu1 %1563  ;;  %v1558_v6 = vpop.permute.xlu0 %1557 }
  0xbe   : > { %v1568_v8 = vsel %vm1565_vm10, %v1562_v2, %v1564_v5  ;;  %v1566_v9 = vsel %vm1565_vm10, %v1558_v6, %v1560_v3 }
  0xbf   : > { %1837 = vmatpush1.msk.msra.mxu0 %vm187_vm1, %v1566_v9  ;;  %1903 = vmatpush3.msk.msra.mxu1 %vm187_vm1, %v1568_v8 }
  0xc0   : > { %1838 = vmatmul.mubr.msk.f32.vlgmr.msra.gmra.mxu0 %vm183_vm2, %v1835_v7  ;;  %1905 = vmatmul.mubr.msk.f32.vlgmr.msra.gmra.mxu1 %vm183_vm2, %v1835_v7 }
  0xca   : > { %v175_v27 = vpop.permute.xlu0 %174 }
  0xd2   : > { %v331_v10 = vpop.f32.mrf.mxu1 }
  0xd3   : > { %v337_v30 = vadd.f32 %v331_v10, %v175_v27 }
  0xd4   : > { %v1866_v0 = vpop.f32.mrf.mxu1  ;;  %v260_v11 = vpop.f32.mrf.mxu0 }
  0xd5   : > { %v335_v29 = vadd.f32 %v260_v11, %v175_v27 }
  0xd6   : > { %v262_v12 = vpop.f32.mrf.mxu0 }
  0xd7   : > { %v336_v32 = vadd.f32 %v262_v12, %v175_v27 }
 0x149   : > { %v433_v14 = vpop.f32.mrf.mxu0 }
 0x14a   : > { %v508_v35 = vadd.f32 %v433_v14, %v335_v29 }
 0x14b   : > { %v435_v17 = vpop.f32.mrf.mxu0 }
 0x14c   : > { %v504_v13 = vpop.f32.mrf.mxu1  ;;  %v509_v37 = vadd.f32 %v435_v17, %v336_v32 }
 0x14d   : > { %v510_v36 = vadd.f32 %v504_v13, %v337_v30 }
 0x14e   : > { %v1871_v15 = vpop.f32.mrf.mxu1 }
 0x150   : > { %v606_v19 = vpop.f32.mrf.mxu0 }
 0x151   : > { %v677_v16 = vpop.f32.mrf.mxu1  ;;  %v681_v39 = vadd.f32 %v606_v19, %v508_v35 }
 0x152   : > { %v608_v21 = vpop.f32.mrf.mxu0  ;;  %v683_v40 = vadd.f32 %v677_v16, %v510_v36 }
 0x153   : > { %v1876_v18 = vpop.f32.mrf.mxu1  ;;  %v682_v42 = vadd.f32 %v608_v21, %v509_v37 }
 0x158   : > { %v779_v23 = vpop.f32.mrf.mxu0 }
 0x159   : > { %v850_v20 = vpop.f32.mrf.mxu1  ;;  %v854_v45 = vadd.f32 %v779_v23, %v681_v39 }
 0x15a   : > { %v781_v25 = vpop.f32.mrf.mxu0  ;;  %v856_v46 = vadd.f32 %v850_v20, %v683_v40 }
 0x15b   : > { %v1881_v22 = vpop.f32.mrf.mxu1  ;;  %v855_v48 = vadd.f32 %v781_v25, %v682_v42 }
 0x160   : > { %v952_v28 = vpop.f32.mrf.mxu0 }
 0x161   : > { %v1023_v24 = vpop.f32.mrf.mxu1  ;;  %v1027_v49 = vadd.f32 %v952_v28, %v854_v45 }
 0x162   : > { %v954_v33 = vpop.f32.mrf.mxu0  ;;  %v1029_v50 = vadd.f32 %v1023_v24, %v856_v46 }
 0x163   : > { %v1886_v26 = vpop.f32.mrf.mxu1  ;;  %v1028_v53 = vadd.f32 %v954_v33, %v855_v48 }
 0x168   : > { %v1196_v31 = vpop.f32.mrf.mxu1  ;;  %v1125_v38 = vpop.f32.mrf.mxu0 }
 0x169   : > { %v1200_v56 = vadd.f32 %v1125_v38, %v1027_v49  ;;  %v1202_v57 = vadd.f32 %v1196_v31, %v1029_v50 }
 0x16a   : > { %v1891_v34 = vpop.f32.mrf.mxu1  ;;  %v1127_v43 = vpop.f32.mrf.mxu0 }
 0x16b   : > { %v1201_v58 = vadd.f32 %v1127_v43, %v1028_v53 }
 0x170   : > { %v1369_v41 = vpop.f32.mrf.mxu1  ;;  %v1298_v47 = vpop.f32.mrf.mxu0 }
 0x171   : > { %v1373_v59 = vadd.f32 %v1298_v47, %v1200_v56  ;;  %v1375_v60 = vadd.f32 %v1369_v41, %v1202_v57 }
 0x172   : > { %v1896_v44 = vpop.f32.mrf.mxu1  ;;  %v1300_v51 = vpop.f32.mrf.mxu0 }
 0x173   : > { %v1374_v62 = vadd.f32 %v1300_v51, %v1201_v58 }
 0x178   : > { %v1542_v52 = vpop.f32.mrf.mxu1  ;;  %v1471_v54 = vpop.f32.mrf.mxu0 }
 0x179   : > { %v1546_v63 = vadd.f32 %v1471_v54, %v1373_v59  ;;  %v1548_v1 = vadd.f32 %v1542_v52, %v1375_v60 }
 0x17a   : > { %v1901_v55 = vpop.f32.mrf.mxu1  ;;  %v1473_v61 = vpop.f32.mrf.mxu0 }
 0x17b   : > { %v1547_v4 = vadd.f32 %v1473_v61, %v1374_v62 }
 0x180   : > { %v1644_v2 = vpop.f32.mrf.mxu0  ;;  %v1715_v3 = vpop.f32.mrf.mxu1 }
 0x181   : > { %v1719_v5 = vadd.f32 %v1644_v2, %v1546_v63  ;;  %v1721_v6 = vadd.f32 %v1715_v3, %v1548_v1 }
 0x182   : > { %v1646_v7 = vpop.f32.mrf.mxu0  ;;  %v1906_v8 = vpop.f32.mrf.mxu1 }
 0x183   : > { %1722 = vst [vmem:[%s170_s24] sm:$0xff] %v1719_v5  ;;  %1724 = vst [vmem:[%s170_s24 + $0x10] sm:$0xff] %v1721_v6  ;;  %v1720_v9 = vadd.f32 %v1646_v7, %v1547_v4 }
 0x185   : > { %1723 = vst [vmem:[%s170_s24 + $0x8] sm:$0xff] %v1720_v9 }
 0x186 PF: > { %s13_s12 = sadd.s32 1, %s1936_s12  }
 0x187   : > { %p10_p4 = scmp.ge.s32.totalorder %s13_s12, 4  }
 0x189   :  { %12 = sbr.rel (!%p10_p4) target bundleno = 1 (0x1), region = 70 }

</bundles_post_ra>
